<compile_context>
chip_gen: v6e
topology: v6e:2x2x1
jax: 0.10.0
libtpu: 0.0.40
codegen_flags: <defaults>
</compile_context>

<pallas_src>
import functools

import jax
import jax.numpy as jnp
from jax.experimental import pallas as pl
from jax.experimental.pallas import tpu as pltpu

LANES = 128
CHUNK_ROWS = 1024      # rows per in-kernel compute chunk (bounds f32 temps)
MAX_TM = 8192          # rows per DMA tile: 8192*128*4B = 4 MiB per input block
ALPHA = 0.5
BETA = 0.5


def _tensorcores_per_chip():
    """2 for megacore / v7x-style parts, else 1.  A wrong guess stays correct
    (the kernel masks duplicated/padded tiles), it only costs a little perf."""
    try:
        kind = jax.devices()[0].device_kind.lower()
    except Exception:
        return 1
    if any(tag in kind for tag in ("v4", "v5p", "7")):
        return 2
    return 1


def _tversky_kernel(x_ref, t_ref, tp_ref, ps_ref, ts_ref, *,
                    tm, chunk, tiles_per_core, m_rows):
    c = pl.program_id(0)          # core split           ("parallel")
    i = pl.program_id(1)          # row tile within core  ("arbitrary")

    @pl.when(i == 0)
    def _init():
        tp_ref[...] = jnp.zeros_like(tp_ref)
        ps_ref[...] = jnp.zeros_like(ps_ref)
        ts_ref[...] = jnp.zeros_like(ts_ref)

    row0 = (c * tiles_per_core + i) * tm      # nominal first row of this tile
    n_chunks = tm // chunk                    # static (tm % chunk == 0)

    def fold(v):                              # (chunk,128) -> (8,128) VPU adds
        return v.reshape(chunk // 8, 8, LANES).sum(axis=0)

    def accumulate(p, tt):
        tp_ref[...] += fold(p * tt)
        ps_ref[...] += fold(p)
        ts_ref[...] += fold(tt)

    def load(k):
        r = pl.multiple_of(k * chunk, 8)
        x = x_ref[pl.ds(r, chunk), :].astype(jnp.float32)
        t = t_ref[pl.ds(r, chunk), :].astype(jnp.float32)
        return x, t

    # Only the tail tile (block padding past m_rows) and clamped duplicate
    # tiles (row0 >= m_rows) need the row mask.  Interior tiles take the
    # unmasked fast path; lane-level sentinel padding (-1e9 / 0) already
    # contributes exactly zero through sigmoid.
    needs_mask = row0 + tm > m_rows

    @pl.when(jnp.logical_not(needs_mask))
    def _fast():
        @pl.loop(0, n_chunks)
        def _(k):
            x, t = load(k)
            accumulate(jax.nn.sigmoid(x), t)     # sigmoid -> EUP slot

    @pl.when(needs_mask)
    def _masked():
        @pl.loop(0, n_chunks)
        def _(k):
            x, t = load(k)
            rid = jax.lax.broadcasted_iota(jnp.int32, (chunk, LANES), 0)
            valid = (row0 + k * chunk + rid) < m_rows
            p = jnp.where(valid, jax.nn.sigmoid(x), 0.0)
            tt = jnp.where(valid, t, 0.0)
            accumulate(p, tt)
    # TODO(synk): if a v7x bundle dump shows the VALU slot saturating, move
    # the (chunk,128)->(8,128) fold onto the MXU (ones(1,chunk) @ v).


@functools.partial(jax.jit, static_argnames=("smooth", "alpha", "beta"))
def tversky_loss(inputs, targets, smooth=1.0, alpha=ALPHA, beta=BETA):
    """1 - Tversky index of sigmoid(inputs) vs targets (PyTorch TverskyLoss)."""
    x = jnp.ravel(inputs)
    t = jnp.ravel(targets)
    if not jnp.issubdtype(x.dtype, jnp.floating):
        x = x.astype(jnp.float32)     # -1e9 sentinel needs a float stream
    if not jnp.issubdtype(t.dtype, jnp.floating):
        t = t.astype(jnp.float32)
    n = x.shape[0]

    # Pad only to an (8*128)-element multiple (a no-op for typical NCHW
    # shapes).  x pads to -1e9 -> sigmoid == 0, t pads to 0, so padded
    # elements contribute exactly nothing to any partial sum.
    # TODO(synk): for large ragged inputs this jnp.pad is one extra HBM pass;
    # a tail-in-JAX + aligned-prefix-in-kernel split would avoid it.
    chunk_elems = 8 * LANES
    pad = (-n) % chunk_elems
    if pad:
        x = jnp.pad(x, (0, pad), constant_values=-1e9)
        t = jnp.pad(t, (0, pad), constant_values=0)

    m_rows = (n + pad) // LANES                 # multiple of 8
    x2 = x.reshape(m_rows, LANES)
    t2 = t.reshape(m_rows, LANES)

    # DMA tile: as big as possible (amortize ~0.35 us/step) while keeping the
    # in-kernel compute chunk small.  tm is a multiple of CHUNK_ROWS, or all
    # rows for small inputs.
    if m_rows <= CHUNK_ROWS:
        tm = m_rows
    else:
        tm = min(MAX_TM, (m_rows // CHUNK_ROWS) * CHUNK_ROWS)
    chunk = tm if tm <= CHUNK_ROWS else CHUNK_ROWS
    n_tiles = pl.cdiv(m_rows, tm)

    # Core split: only when it divides evenly (no duplicate DMA) or when one
    # duplicated tile is noise relative to the total tile count.
    ncores = _tensorcores_per_chip()
    if ncores > n_tiles or (ncores > 1 and n_tiles % ncores != 0 and n_tiles < 8):
        ncores = 1
    tiles_per_core = pl.cdiv(n_tiles, ncores)
    exact = tiles_per_core * ncores == n_tiles

    if exact:
        def in_map(c, i):
            return (c * tiles_per_core + i, 0)
    else:
        def in_map(c, i):
            # Clamped duplicate blocks are fully masked out in-kernel.
            return (jnp.minimum(c * tiles_per_core + i, n_tiles - 1), 0)

    in_spec = pl.BlockSpec((tm, LANES), in_map)
    out_spec = pl.BlockSpec((8, LANES), lambda c, i: (c, 0))
    part_shape = jax.ShapeDtypeStruct((ncores * 8, LANES), jnp.float32)

    kernel = functools.partial(_tversky_kernel, tm=tm, chunk=chunk,
                               tiles_per_core=tiles_per_core, m_rows=m_rows)

    tp_p, ps_p, ts_p = pl.pallas_call(
        kernel,
        out_shape=(part_shape, part_shape, part_shape),
        grid_spec=pltpu.PrefetchScalarGridSpec(
            num_scalar_prefetch=0,
            grid=(ncores, tiles_per_core),
            in_specs=[in_spec, in_spec],
            out_specs=[out_spec, out_spec, out_spec],
        ),
        compiler_params=pltpu.CompilerParams(
            dimension_semantics=("parallel", "arbitrary"),
            vmem_limit_bytes=48 * 1024 * 1024),
    )(x2, t2)

    # Tiny (ncores*8,128) partials: cross-lane reduce + Tversky math in JAX.
    tp = jnp.sum(tp_p)
    p_sum = jnp.sum(ps_p)
    t_sum = jnp.sum(ts_p)
    fp = p_sum - tp                      # sum((1 - t) * p)
    fn = t_sum - tp                      # sum(t * (1 - p))
    tversky = (tp + smooth) / (tp + alpha * fp + beta * fn + smooth)
    return 1.0 - tversky


def _reference(inputs, targets, smooth=1.0, alpha=ALPHA, beta=BETA):
    p = jax.nn.sigmoid(inputs.astype(jnp.float32)).ravel()
    t = targets.astype(jnp.float32).ravel()
    tp = jnp.sum(p * t)
    fp = jnp.sum((1.0 - t) * p)
    fn = jnp.sum(t * (1.0 - p))
    tversky = (tp + smooth) / (tp + alpha * fp + beta * fn + smooth)
    return 1.0 - tversky


if __name__ == "__main__":
    key = jax.random.PRNGKey(0)
    k1, k2, k3, k4, k5, k6 = jax.random.split(key, 6)

    # 1) NCHW logits and binary targets, matching a segmentation head.
    x = jax.random.normal(k1, (2, 4, 16, 16), dtype=jnp.float32)
    tgt = (jax.random.uniform(k2, (2, 4, 16, 16)) > 0.5).astype(jnp.float32)
    loss = tversky_loss(x, tgt)
    jax.block_until_ready(loss)
    ref = _reference(x, tgt)
    assert jnp.allclose(loss, ref, atol=1e-5, rtol=1e-5), (loss, ref)

    # 2) Ragged shape exercising the sentinel-pad path.
    x2 = jax.random.normal(k3, (1, 3, 10, 13), dtype=jnp.float32)
    t2 = (jax.random.uniform(k4, (1, 3, 10, 13)) > 0.5).astype(jnp.float32)
    loss2 = tversky_loss(x2, t2)
    jax.block_until_ready(loss2)
    ref2 = _reference(x2, t2)
    assert jnp.allclose(loss2, ref2, atol=1e-5, rtol=1e-5), (loss2, ref2)

    # 3) Multi-tile shape exercising the masked tail tile / core-split path.
    x3 = jax.random.normal(k5, (3, 5, 97, 101), dtype=jnp.float32)
    t3 = (jax.random.uniform(k6, (3, 5, 97, 101)) > 0.5).astype(jnp.float32)
    loss3 = tversky_loss(x3, t3)
    jax.block_until_ready(loss3)
    ref3 = _reference(x3, t3)
    assert jnp.allclose(loss3, ref3, atol=1e-5, rtol=1e-4), (loss3, ref3)

    print("KERNEL_OK")
</pallas_src>

<mosaic_0001>
module attributes {stable_mosaic.version = 11 : i64} {
  func.func @_tversky_kernel(%arg0: i32, %arg1: i32, %arg2: memref<16x128xf32, #tpu.memory_space<vmem>>, %arg3: memref<16x128xf32, #tpu.memory_space<vmem>>, %arg4: memref<8x128xf32, #tpu.memory_space<vmem>>, %arg5: memref<8x128xf32, #tpu.memory_space<vmem>>, %arg6: memref<8x128xf32, #tpu.memory_space<vmem>>) attributes {dimension_semantics = [#tpu.dimension_semantics<parallel>, #tpu.dimension_semantics<arbitrary>], iteration_bounds = array<i64: 1, 1>, scalar_prefetch = 0 : i64, scratch_operands = 0 : i64, tpu.core_type = #tpu.core_type<tc>, window_params = [{transform_indices = @transform_0, window_bounds = array<i64: 16, 128>}, {transform_indices = @transform_1, window_bounds = array<i64: 16, 128>}, {transform_indices = @transform_2, window_bounds = array<i64: 8, 128>}, {transform_indices = @transform_3, window_bounds = array<i64: 8, 128>}, {transform_indices = @transform_4, window_bounds = array<i64: 8, 128>}]} {
    %c0_i32 = arith.constant 0 : i32
    %0 = arith.cmpi eq, %arg1, %c0_i32 : i32
    %1 = arith.extui %0 : i1 to i32
    %c0_i32_0 = arith.constant 0 : i32
    %2 = arith.cmpi ne, %1, %c0_i32_0 : i32
    scf.if %2 {
      %cst = arith.constant 0.000000e+00 : f32
      %13 = vector.broadcast %cst : f32 to vector<8x128xf32>
      %c0 = arith.constant 0 : index
      %c0_5 = arith.constant 0 : index
      %14 = vector.load %arg4[%c0, %c0_5] : memref<8x128xf32, #tpu.memory_space<vmem>>, vector<8x128xf32>
      tpu.vector_store %arg4[%c0, %c0_5], %13 {strides = array<i32>} : memref<8x128xf32, #tpu.memory_space<vmem>>, vector<8x128xf32>,
      %cst_6 = arith.constant 0.000000e+00 : f32
      %15 = vector.broadcast %cst_6 : f32 to vector<8x128xf32>
      %c0_7 = arith.constant 0 : index
      %c0_8 = arith.constant 0 : index
      %16 = vector.load %arg5[%c0_7, %c0_8] : memref<8x128xf32, #tpu.memory_space<vmem>>, vector<8x128xf32>
      tpu.vector_store %arg5[%c0_7, %c0_8], %15 {strides = array<i32>} : memref<8x128xf32, #tpu.memory_space<vmem>>, vector<8x128xf32>,
      %cst_9 = arith.constant 0.000000e+00 : f32
      %17 = vector.broadcast %cst_9 : f32 to vector<8x128xf32>
      %c0_10 = arith.constant 0 : index
      %c0_11 = arith.constant 0 : index
      %18 = vector.load %arg6[%c0_10, %c0_11] : memref<8x128xf32, #tpu.memory_space<vmem>>, vector<8x128xf32>
      tpu.vector_store %arg6[%c0_10, %c0_11], %17 {strides = array<i32>} : memref<8x128xf32, #tpu.memory_space<vmem>>, vector<8x128xf32>,
    } else {
    }
    %c1_i32 = arith.constant 1 : i32
    %3 = arith.muli %arg0, %c1_i32 : i32
    %4 = arith.addi %3, %arg1 : i32
    %c16_i32 = arith.constant 16 : i32
    %5 = arith.muli %4, %c16_i32 : i32
    %c16_i32_1 = arith.constant 16 : i32
    %6 = arith.addi %5, %c16_i32_1 : i32
    %c16_i32_2 = arith.constant 16 : i32
    %7 = arith.cmpi sgt, %6, %c16_i32_2 : i32
    %true = arith.constant true
    %8 = arith.xori %7, %true : i1
    %9 = arith.extui %8 : i1 to i32
    %c0_i32_3 = arith.constant 0 : i32
    %10 = arith.cmpi ne, %9, %c0_i32_3 : i32
    scf.if %10 {
      %c0_i32_5 = arith.constant 0 : i32
      %c1_i32_6 = arith.constant 1 : i32
      %13 = arith.muli %c0_i32_5, %c1_i32_6 : i32
      %c0_i32_7 = arith.constant 0 : i32
      %14 = arith.addi %c0_i32_7, %13 : i32
      %c16_i32_8 = arith.constant 16 : i32
      %15 = arith.muli %14, %c16_i32_8 : i32
      %16 = tpu.assume_multiple %15, 8 : i32
      %17 = arith.index_cast %16 : i32 to index
      %c0 = arith.constant 0 : index
      %18 = vector.load %arg2[%17, %c0] : memref<16x128xf32, #tpu.memory_space<vmem>>, vector<16x128xf32>
      %19 = arith.index_cast %16 : i32 to index
      %c0_9 = arith.constant 0 : index
      %20 = vector.load %arg3[%19, %c0_9] : memref<16x128xf32, #tpu.memory_space<vmem>>, vector<16x128xf32>
      %21 = arith.negf %18 : vector<16x128xf32>
      %22 = math.exp %21 : vector<16x128xf32>
      %cst = arith.constant 1.000000e+00 : f32
      %23 = vector.broadcast %cst : f32 to vector<16x128xf32>
      %24 = arith.addf %23, %22 : vector<16x128xf32>
      %25 = arith.divf %23, %24 : vector<16x128xf32>
      %c0_10 = arith.constant 0 : index
      %c0_11 = arith.constant 0 : index
      %26 = vector.load %arg4[%c0_10, %c0_11] : memref<8x128xf32, #tpu.memory_space<vmem>>, vector<8x128xf32>
      %27 = arith.mulf %25, %20 : vector<16x128xf32>
      %28 = vector.shape_cast %27 : vector<16x128xf32> to vector<2x8x128xf32>
      %cst_12 = arith.constant dense<0.000000e+00> : vector<8x128xf32>
      %29 = vector.multi_reduction <add>, %28, %cst_12 [0] : vector<2x8x128xf32> to vector<8x128xf32>
      %30 = arith.addf %26, %29 : vector<8x128xf32>
      %c0_13 = arith.constant 0 : index
      %c0_14 = arith.constant 0 : index
      %31 = vector.load %arg4[%c0_13, %c0_14] : memref<8x128xf32, #tpu.memory_space<vmem>>, vector<8x128xf32>
      tpu.vector_store %arg4[%c0_13, %c0_14], %30 {strides = array<i32>} : memref<8x128xf32, #tpu.memory_space<vmem>>, vector<8x128xf32>,
      %c0_15 = arith.constant 0 : index
      %c0_16 = arith.constant 0 : index
      %32 = vector.load %arg5[%c0_15, %c0_16] : memref<8x128xf32, #tpu.memory_space<vmem>>, vector<8x128xf32>
      %33 = vector.shape_cast %25 : vector<16x128xf32> to vector<2x8x128xf32>
      %cst_17 = arith.constant dense<0.000000e+00> : vector<8x128xf32>
      %34 = vector.multi_reduction <add>, %33, %cst_17 [0] : vector<2x8x128xf32> to vector<8x128xf32>
      %35 = arith.addf %32, %34 : vector<8x128xf32>
      %c0_18 = arith.constant 0 : index
      %c0_19 = arith.constant 0 : index
      %36 = vector.load %arg5[%c0_18, %c0_19] : memref<8x128xf32, #tpu.memory_space<vmem>>, vector<8x128xf32>
      tpu.vector_store %arg5[%c0_18, %c0_19], %35 {strides = array<i32>} : memref<8x128xf32, #tpu.memory_space<vmem>>, vector<8x128xf32>,
      %c0_20 = arith.constant 0 : index
      %c0_21 = arith.constant 0 : index
      %37 = vector.load %arg6[%c0_20, %c0_21] : memref<8x128xf32, #tpu.memory_space<vmem>>, vector<8x128xf32>
      %38 = vector.shape_cast %20 : vector<16x128xf32> to vector<2x8x128xf32>
      %cst_22 = arith.constant dense<0.000000e+00> : vector<8x128xf32>
      %39 = vector.multi_reduction <add>, %38, %cst_22 [0] : vector<2x8x128xf32> to vector<8x128xf32>
      %40 = arith.addf %37, %39 : vector<8x128xf32>
      %c0_23 = arith.constant 0 : index
      %c0_24 = arith.constant 0 : index
      %41 = vector.load %arg6[%c0_23, %c0_24] : memref<8x128xf32, #tpu.memory_space<vmem>>, vector<8x128xf32>
      tpu.vector_store %arg6[%c0_23, %c0_24], %40 {strides = array<i32>} : memref<8x128xf32, #tpu.memory_space<vmem>>, vector<8x128xf32>,
      %c1_i32_25 = arith.constant 1 : i32
    } else {
    }
    %11 = arith.extui %7 : i1 to i32
    %c0_i32_4 = arith.constant 0 : i32
    %12 = arith.cmpi ne, %11, %c0_i32_4 : i32
    scf.if %12 {
      %c0_i32_5 = arith.constant 0 : i32
      %c1_i32_6 = arith.constant 1 : i32
      %13 = arith.muli %c0_i32_5, %c1_i32_6 : i32
      %c0_i32_7 = arith.constant 0 : i32
      %14 = arith.addi %c0_i32_7, %13 : i32
      %c16_i32_8 = arith.constant 16 : i32
      %15 = arith.muli %14, %c16_i32_8 : i32
      %16 = tpu.assume_multiple %15, 8 : i32
      %17 = arith.index_cast %16 : i32 to index
      %c0 = arith.constant 0 : index
      %18 = vector.load %arg2[%17, %c0] : memref<16x128xf32, #tpu.memory_space<vmem>>, vector<16x128xf32>
      %19 = arith.index_cast %16 : i32 to index
      %c0_9 = arith.constant 0 : index
      %20 = vector.load %arg3[%19, %c0_9] : memref<16x128xf32, #tpu.memory_space<vmem>>, vector<16x128xf32>
      %21 = tpu.iota {dimensions = array<i32: 0>} : vector<16x128xi32>
      %c16_i32_10 = arith.constant 16 : i32
      %22 = arith.muli %14, %c16_i32_10 : i32
      %23 = arith.addi %5, %22 : i32
      %24 = vector.broadcast %23 : i32 to vector<16x128xi32>
      %25 = arith.addi %24, %21 : vector<16x128xi32>
      %c16_i32_11 = arith.constant 16 : i32
      %26 = vector.broadcast %c16_i32_11 : i32 to vector<16x128xi32>
      %27 = arith.cmpi slt, %25, %26 : vector<16x128xi32>
      %28 = arith.negf %18 : vector<16x128xf32>
      %29 = math.exp %28 : vector<16x128xf32>
      %cst = arith.constant 1.000000e+00 : f32
      %30 = vector.broadcast %cst : f32 to vector<16x128xf32>
      %31 = arith.addf %30, %29 : vector<16x128xf32>
      %32 = arith.divf %30, %31 : vector<16x128xf32>
      %cst_12 = arith.constant 0.000000e+00 : f32
      %33 = vector.broadcast %cst_12 : f32 to vector<16x128xf32>
      %34 = arith.select %27, %32, %33 : vector<16x128xi1>, vector<16x128xf32>
      %cst_13 = arith.constant 0.000000e+00 : f32
      %35 = vector.broadcast %cst_13 : f32 to vector<16x128xf32>
      %36 = arith.select %27, %20, %35 : vector<16x128xi1>, vector<16x128xf32>
      %c0_14 = arith.constant 0 : index
      %c0_15 = arith.constant 0 : index
      %37 = vector.load %arg4[%c0_14, %c0_15] : memref<8x128xf32, #tpu.memory_space<vmem>>, vector<8x128xf32>
      %38 = arith.mulf %34, %36 : vector<16x128xf32>
      %39 = vector.shape_cast %38 : vector<16x128xf32> to vector<2x8x128xf32>
      %cst_16 = arith.constant dense<0.000000e+00> : vector<8x128xf32>
      %40 = vector.multi_reduction <add>, %39, %cst_16 [0] : vector<2x8x128xf32> to vector<8x128xf32>
      %41 = arith.addf %37, %40 : vector<8x128xf32>
      %c0_17 = arith.constant 0 : index
      %c0_18 = arith.constant 0 : index
      %42 = vector.load %arg4[%c0_17, %c0_18] : memref<8x128xf32, #tpu.memory_space<vmem>>, vector<8x128xf32>
      tpu.vector_store %arg4[%c0_17, %c0_18], %41 {strides = array<i32>} : memref<8x128xf32, #tpu.memory_space<vmem>>, vector<8x128xf32>,
      %c0_19 = arith.constant 0 : index
      %c0_20 = arith.constant 0 : index
      %43 = vector.load %arg5[%c0_19, %c0_20] : memref<8x128xf32, #tpu.memory_space<vmem>>, vector<8x128xf32>
      %44 = vector.shape_cast %34 : vector<16x128xf32> to vector<2x8x128xf32>
      %cst_21 = arith.constant dense<0.000000e+00> : vector<8x128xf32>
      %45 = vector.multi_reduction <add>, %44, %cst_21 [0] : vector<2x8x128xf32> to vector<8x128xf32>
      %46 = arith.addf %43, %45 : vector<8x128xf32>
      %c0_22 = arith.constant 0 : index
      %c0_23 = arith.constant 0 : index
      %47 = vector.load %arg5[%c0_22, %c0_23] : memref<8x128xf32, #tpu.memory_space<vmem>>, vector<8x128xf32>
      tpu.vector_store %arg5[%c0_22, %c0_23], %46 {strides = array<i32>} : memref<8x128xf32, #tpu.memory_space<vmem>>, vector<8x128xf32>,
      %c0_24 = arith.constant 0 : index
      %c0_25 = arith.constant 0 : index
      %48 = vector.load %arg6[%c0_24, %c0_25] : memref<8x128xf32, #tpu.memory_space<vmem>>, vector<8x128xf32>
      %49 = vector.shape_cast %36 : vector<16x128xf32> to vector<2x8x128xf32>
      %cst_26 = arith.constant dense<0.000000e+00> : vector<8x128xf32>
      %50 = vector.multi_reduction <add>, %49, %cst_26 [0] : vector<2x8x128xf32> to vector<8x128xf32>
      %51 = arith.addf %48, %50 : vector<8x128xf32>
      %c0_27 = arith.constant 0 : index
      %c0_28 = arith.constant 0 : index
      %52 = vector.load %arg6[%c0_27, %c0_28] : memref<8x128xf32, #tpu.memory_space<vmem>>, vector<8x128xf32>
      tpu.vector_store %arg6[%c0_27, %c0_28], %51 {strides = array<i32>} : memref<8x128xf32, #tpu.memory_space<vmem>>, vector<8x128xf32>,
      %c1_i32_29 = arith.constant 1 : i32
    } else {
    }
    return
  }
  func.func @transform_0(%arg0: i32, %arg1: i32) -> (i32, i32) {
    %c1_i32 = arith.constant 1 : i32
    %0 = arith.muli %arg0, %c1_i32 : i32
    %1 = arith.addi %0, %arg1 : i32
    %c0_i32 = arith.constant 0 : i32
    %c0_i32_0 = arith.constant 0 : i32
    return %1, %c0_i32 : i32, i32
  }
  func.func @transform_1(%arg0: i32, %arg1: i32) -> (i32, i32) {
    %c1_i32 = arith.constant 1 : i32
    %0 = arith.muli %arg0, %c1_i32 : i32
    %1 = arith.addi %0, %arg1 : i32
    %c0_i32 = arith.constant 0 : i32
    %c0_i32_0 = arith.constant 0 : i32
    return %1, %c0_i32 : i32, i32
  }
  func.func @transform_2(%arg0: i32, %arg1: i32) -> (i32, i32) {
    %c0_i32 = arith.constant 0 : i32
    %c0_i32_0 = arith.constant 0 : i32
    return %arg0, %c0_i32 : i32, i32
  }
  func.func @transform_3(%arg0: i32, %arg1: i32) -> (i32, i32) {
    %c0_i32 = arith.constant 0 : i32
    %c0_i32_0 = arith.constant 0 : i32
    return %arg0, %c0_i32 : i32, i32
  }
  func.func @transform_4(%arg0: i32, %arg1: i32) -> (i32, i32) {
    %c0_i32 = arith.constant 0 : i32
    %c0_i32_0 = arith.constant 0 : i32
    return %arg0, %c0_i32 : i32, i32
  }
}

</mosaic_0001>

<bundles_post_ra>
// kernel: tversky_loss.1
= control target key start
LH: loop header
LB: loop body
LE: loop exit
PB: predicated region body
PF: predicated region fallthrough
CT: control target
= control target key end

     0   :  { %s231_s0 = inlined_call_operand.vmem [shape: f32[16,128], index: 0, kind: input, shape index: {}]   ;;  %s232_s1 = inlined_call_operand.vmem [shape: f32[16,128], index: 1, kind: input, shape index: {}]   ;;  %s233_s4 = inlined_call_operand.vmem [shape: f32[8,128], index: 4, kind: output, shape index: {2}]   ;;  %s234_s3 = inlined_call_operand.vmem [shape: f32[8,128], index: 3, kind: output, shape index: {1}]   ;;  %s235_s2 = inlined_call_operand.vmem [shape: f32[8,128], index: 2, kind: output, shape index: {0}]  }
   0x1   :  { %v73_v0 = vld [vmem:[%s231_s0] sm:$0xff]  ;;  %v74_v1 = vld [vmem:[%s231_s0 + $0x8] sm:$0xff] }
   0x2   :  { %v75_v2 = vld [vmem:[%s232_s1] sm:$0xff]  ;;  %v76_v3 = vld [vmem:[%s232_s1 + $0x8] sm:$0xff]  ;;  %v172_v4 = vmul.f32 -1.442695, %v73_v0  ;;  %v173_v5 = vmul.f32 -1.442695, %v74_v1 }
   0x3   :  { %v100_v6 = vadd.f32 %v76_v3, %v75_v2 }
   0x4   :  { %177 = vpow2.f32 %v172_v4 }
   0x5   :  { %179 = vpow2.f32 %v173_v5  ;;  %102 = vst [vmem:[%s233_s4] sm:$0xff] %v100_v6 }
  0x11   :  { %v178_v7 = vpop.eup %177 }
  0x12   :  { %v180_v8 = vpop.eup %179  ;;  %v83_v9 = vadd.f32 1.0, %v178_v7 }
  0x13   :  { %v84_v10 = vadd.f32 1.0, %v180_v8 }
  0x14   :  { %181 = vrcp.f32 %v83_v9 }
  0x15   :  { %183 = vrcp.f32 %v84_v10 }
  0x21   :  { %v182_v11 = vpop.eup %181 }
  0x22   :  { %v184_v12 = vpop.eup %183  ;;  %v90_v13 = vmul.f32 %v182_v11, %v75_v2 }
  0x23   :  { %v91_v14 = vmul.f32 %v184_v12, %v76_v3  ;;  %v96_v15 = vadd.f32 %v184_v12, %v182_v11 }
  0x25   :  { %v92_v16 = vadd.f32 %v91_v14, %v90_v13  ;;  %98 = vst [vmem:[%s234_s3] sm:$0xff] %v96_v15 }
  0x27   :  { %94 = vst [vmem:[%s235_s2] sm:$0xff] %v92_v16 }

</bundles_post_ra>
